<compile_context>
chip_gen: v7x
topology: tpu7x:2x2x1
jax: 0.10.0
libtpu: 0.0.40
codegen_flags: <defaults>
</compile_context>

<pallas_src>
import numpy as np
import jax
import jax.numpy as jnp
from jax.experimental import pallas as pl
from jax.experimental.pallas import tpu as pltpu


_NEG_BIG = float(np.finfo(np.float32).min)   # stand-in for torch's -inf fill


# ----------------------------------------------------------------------------
# Pallas kernel: proj(actor_embeds) -> masked logits -> normalized logits,
# per-row [log_prob(action), entropy] packed into one output.
# ----------------------------------------------------------------------------
def _action_head_kernel(emb_ref, w_ref, b_ref, mask_ref, act_ref,
                        logits_ref, stats_ref):
    emb = emb_ref[...]                       # (TA, D) bf16
    w = w_ref[...]                           # (D, C) bf16, resident across grid

    # Linear projection on the MXU, f32 accumulation, f32 bias add.
    raw = jnp.dot(emb, w, preferred_element_type=jnp.float32) + b_ref[...]  # (TA, C)

    # masked_fill(mask == 0, -inf) -- finfo.min instead of -inf so an all-masked
    # row cannot produce NaN (torch Categorical.entropy clamps to finfo.min).
    allowed = mask_ref[...].astype(jnp.int32) != 0           # (TA, C)
    masked = jnp.where(allowed, raw, _NEG_BIG)

    # Stable log-softmax == torch Categorical's normalized logits.
    row_max = jnp.max(masked, axis=-1, keepdims=True)        # (TA, 1)
    shifted = masked - row_max
    exps = jnp.exp(shifted)                                   # single EUP pass
    sum_exp = jnp.sum(exps, axis=-1, keepdims=True)           # (TA, 1)
    norm = shifted - jnp.log(sum_exp)                         # (TA, C)
    logits_ref[...] = norm

    # probs reuses exps; approximate reciprocal runs on the free EUP slot.
    probs = exps * pl.reciprocal(sum_exp, approx=True)

    # entropy = -sum(clamp(logits, finfo.min) * probs)  (torch semantics)
    clamped = jnp.maximum(norm, _NEG_BIG)
    entropy = -jnp.sum(clamped * probs, axis=-1, keepdims=True)   # (TA, 1)

    # log_prob(action): one-hot gather of the normalized logits.
    act = act_ref[...]                                        # (TA, 1) int32
    lane = jax.lax.broadcasted_iota(jnp.int32, norm.shape, 1)
    logprob = jnp.sum(jnp.where(lane == act, norm, 0.0),
                      axis=-1, keepdims=True)                 # (TA, 1)

    stats_ref[:, 0:1] = logprob
    stats_ref[:, 1:2] = entropy


def _choose_row_tile(A):
    # Large tiles amortize the ~0.35us per-step overhead; multiple of 128 keeps
    # the MXU M dimension aligned on v5e.  512 rows is VMEM-safe on all gens
    # (could be raised to 1024+ on v6e's 128 MiB VMEM).
    for ta in (128, 256, 512):
        if A <= ta:
            return ta
    return 512


@jax.jit
def _run_action_head(actor_embeds, weight, bias, mask, action):
    A, D = actor_embeds.shape
    C = weight.shape[0]

    TA = _choose_row_tile(A)
    A_pad = ((A + TA - 1) // TA) * TA
    grid = (A_pad // TA,)
    pad = A_pad - A

    # bf16 matmul operands; pre-transposed resident weight; int8 mask.
    emb = jnp.pad(actor_embeds.astype(jnp.bfloat16), ((0, pad), (0, 0)))
    w_t = weight.astype(jnp.bfloat16).T                        # (D, C)
    b2 = bias.reshape(1, C).astype(jnp.float32)
    m_i8 = jnp.pad((mask != 0).astype(jnp.int8), ((0, pad), (0, 0)),
                   constant_values=1)                          # pad rows stay valid
    act2 = jnp.pad(action.astype(jnp.int32).reshape(A, 1), ((0, pad), (0, 0)))

    # VMEM budget: 2 pipeline buffers per tiled array + the resident weight/bias.
    per_step = TA * D * 2 + TA * C * 1 + TA * 4 + TA * C * 4 + TA * 2 * 4
    resident = D * C * 2 + C * 4
    vmem_limit = int(min(64 * 2**20, max(32 * 2**20, 4 * (2 * per_step + resident))))

    logits_p, stats_p = pl.pallas_call(
        _action_head_kernel,
        out_shape=(
            jax.ShapeDtypeStruct((A_pad, C), jnp.float32),
            jax.ShapeDtypeStruct((A_pad, 2), jnp.float32),
        ),
        grid_spec=pltpu.PrefetchScalarGridSpec(
            num_scalar_prefetch=0,
            grid=grid,
            in_specs=[
                pl.BlockSpec((TA, D), lambda i: (i, 0)),   # emb tile
                pl.BlockSpec((D, C), lambda i: (0, 0)),    # weight, resident
                pl.BlockSpec((1, C), lambda i: (0, 0)),    # bias, resident
                pl.BlockSpec((TA, C), lambda i: (i, 0)),   # int8 mask tile
                pl.BlockSpec((TA, 1), lambda i: (i, 0)),   # action tile
            ],
            out_specs=(
                pl.BlockSpec((TA, C), lambda i: (i, 0)),   # normalized logits
                pl.BlockSpec((TA, 2), lambda i: (i, 0)),   # [logprob, entropy]
            ),
        ),
        compiler_params=pltpu.CompilerParams(
            dimension_semantics=("parallel",),
            vmem_limit_bytes=vmem_limit),
    )(emb, w_t, b2, m_i8, act2)

    return logits_p[:A], stats_p[:A, 0], stats_p[:A, 1]


# ----------------------------------------------------------------------------
# Module-equivalent wrapper (ragged bookkeeping / gather / sampling are glue).
# ----------------------------------------------------------------------------
def categorical_action_head_forward(x_data, actors, lengths, weight, bias,
                                    mask=None, prev_actions=None, key=None):
    """Mirrors CategoricalActionHead.forward.

    x_data:       (N, d_model) flat entity embeddings (RaggedTensor.data)
    actors:       (A,) int indices = (mask.actors + index_offsets) squeezed
    lengths:      np.ndarray of per-sequence actor counts (passed through)
    mask:         (A, n_choice) or None; nonzero == allowed action
    prev_actions: (A,) int or None (if None, sample with Gumbel-max)
    returns: (action, lengths, logprob, entropy, normalized_logits)
    """
    n_choice = weight.shape[0]
    A = actors.shape[0]
    if A == 0:
        return (jnp.zeros((0,), jnp.int64), lengths,
                jnp.zeros((0,), jnp.float32), jnp.zeros((0,), jnp.float32),
                jnp.zeros((0, n_choice), jnp.float32))

    actor_embeds = x_data[actors]                              # gather (glue)
    if mask is None:
        mask = jnp.ones((A, n_choice), jnp.int8)

    if prev_actions is not None:
        action = prev_actions.astype(jnp.int32)
        logits, logprob, entropy = _run_action_head(actor_embeds, weight, bias,
                                                    mask, action)
    else:
        # Run the kernel once (dummy action), then Gumbel-max sample from its
        # normalized logits (argmax is invariant to the per-row LSE shift) --
        # no duplicated (A,D)x(D,C) projection in XLA.
        logits, _, entropy = _run_action_head(actor_embeds, weight, bias, mask,
                                              jnp.zeros((A,), jnp.int32))
        g = -jnp.log(-jnp.log(jax.random.uniform(key, logits.shape) + 1e-20)
                     + 1e-20)
        action = jnp.argmax(logits + g, axis=-1).astype(jnp.int32)
        logprob = jnp.take_along_axis(logits, action[:, None], axis=-1)[:, 0]

    # NOTE: masked-out entries carry ~finfo.min (not literal -inf), matching the
    # previous accepted behavior; torch would report -inf there.
    return action.astype(jnp.int64), lengths, logprob, entropy, logits


# ----------------------------------------------------------------------------
# Deterministic parameter init (layer_init: orthogonal(std=0.01), bias=0).
# ----------------------------------------------------------------------------
def init_params(key, d_model, n_choice, std=0.01):
    a = jax.random.normal(key, (max(d_model, n_choice), min(d_model, n_choice)),
                          dtype=jnp.float32)
    q, r = jnp.linalg.qr(a)
    q = q * jnp.sign(jnp.diagonal(r))
    w = q.T if n_choice < d_model else q                       # -> (n_choice, d_model)
    weight = (std * w[:n_choice, :d_model]).astype(jnp.float32)
    bias = jnp.zeros((n_choice,), jnp.float32)
    return weight, bias


if __name__ == "__main__":
    d_model, n_choice = 32, 16
    N, A = 16, 8                                               # entities / actors

    key = jax.random.PRNGKey(0)
    k_x, k_w, k_m, k_a, k_s = jax.random.split(key, 5)

    x_data = jax.random.normal(k_x, (N, d_model), dtype=jnp.float32)
    weight, bias = init_params(k_w, d_model, n_choice)

    # Synthetic ragged bookkeeping: 2 sequences of 4 actors each.
    lengths = np.array([4, 4], dtype=np.int64)
    actors = jnp.array([0, 2, 4, 6, 8, 10, 12, 14], dtype=jnp.int32)

    # Action mask: allow most actions, forbid a few (int8, nonzero == allowed).
    mask = (jax.random.uniform(k_m, (A, n_choice)) > 0.2).astype(jnp.int8)
    mask = mask.at[:, 0].set(1)                                # keep rows feasible

    # prev_actions path (deterministic); choose a legal action per row.
    prev_actions = jnp.argmax(mask * jax.random.uniform(k_a, (A, n_choice)),
                              axis=-1).astype(jnp.int32)

    action, lens, logprob, entropy, logits = categorical_action_head_forward(
        x_data, actors, lengths, weight, bias, mask=mask,
        prev_actions=prev_actions)
    jax.block_until_ready((action, logprob, entropy, logits))

    # Also exercise the sampling path (Gumbel-max from kernel logits).
    s_action, _, s_logprob, s_entropy, _ = categorical_action_head_forward(
        x_data, actors, lengths, weight, bias, mask=mask,
        prev_actions=None, key=k_s)
    jax.block_until_ready((s_action, s_logprob, s_entropy))
    assert s_action.shape == (A,) and s_logprob.shape == (A,)

    # Reference check in plain JAX (same bf16 operands, f32 accumulation).
    emb = x_data[actors]
    raw = jnp.dot(emb.astype(jnp.bfloat16), weight.astype(jnp.bfloat16).T,
                  preferred_element_type=jnp.float32) + bias
    masked = jnp.where(mask != 0, raw, jnp.finfo(jnp.float32).min)
    ref_logits = masked - jax.scipy.special.logsumexp(masked, axis=-1,
                                                      keepdims=True)
    ref_logprob = jnp.take_along_axis(ref_logits, prev_actions[:, None],
                                      axis=-1)[:, 0]
    ref_entropy = -jnp.sum(jnp.exp(ref_logits) * ref_logits, axis=-1)

    assert jnp.allclose(logits, ref_logits, atol=1e-3, rtol=1e-3)
    assert jnp.allclose(logprob, ref_logprob, atol=1e-3, rtol=1e-3)
    assert jnp.allclose(entropy, ref_entropy, atol=5e-3, rtol=5e-3)

    print("KERNEL_OK")
</pallas_src>

<mosaic_0001>
module attributes {stable_mosaic.version = 11 : i64} {
  func.func @_action_head_kernel(%arg0: i32, %arg1: memref<128x32xbf16, #tpu.memory_space<vmem>>, %arg2: memref<32x16xbf16, #tpu.memory_space<vmem>>, %arg3: memref<1x16xf32, #tpu.memory_space<vmem>>, %arg4: memref<128x16xi8, #tpu.memory_space<vmem>>, %arg5: memref<128x1xi32, #tpu.memory_space<vmem>>, %arg6: memref<128x16xf32, #tpu.memory_space<vmem>>, %arg7: memref<128x2xf32, #tpu.memory_space<vmem>>) attributes {dimension_semantics = [#tpu.dimension_semantics<parallel>], iteration_bounds = array<i64: 1>, scalar_prefetch = 0 : i64, scratch_operands = 0 : i64, tpu.core_type = #tpu.core_type<tc>, window_params = [{transform_indices = @transform_0, window_bounds = array<i64: 128, 32>}, {pipeline_mode = #tpu.pipeline_mode<synchronous>, transform_indices = @transform_1, window_bounds = array<i64: 32, 16>}, {pipeline_mode = #tpu.pipeline_mode<synchronous>, transform_indices = @transform_2, window_bounds = array<i64: 1, 16>}, {transform_indices = @transform_3, window_bounds = array<i64: 128, 16>}, {transform_indices = @transform_4, window_bounds = array<i64: 128, 1>}, {transform_indices = @transform_5, window_bounds = array<i64: 128, 16>}, {transform_indices = @transform_6, window_bounds = array<i64: 128, 2>}]} {
    %c0 = arith.constant 0 : index
    %c0_0 = arith.constant 0 : index
    %0 = vector.load %arg1[%c0, %c0_0] : memref<128x32xbf16, #tpu.memory_space<vmem>>, vector<128x32xbf16>
    %c0_1 = arith.constant 0 : index
    %c0_2 = arith.constant 0 : index
    %1 = vector.load %arg2[%c0_1, %c0_2] : memref<32x16xbf16, #tpu.memory_space<vmem>>, vector<32x16xbf16>
    %cst = arith.constant dense<0.000000e+00> : vector<128x16xf32>
    %2 = tpu.matmul %0, %1, %cst {dimension_numbers = #tpu.dot_dimension_numbers<[1], [0], [0], [1], [0, 0, 1, 1], [], []>} : vector<128x32xbf16>, vector<32x16xbf16>, vector<128x16xf32> -> vector<128x16xf32>
    %c0_3 = arith.constant 0 : index
    %c0_4 = arith.constant 0 : index
    %3 = vector.load %arg3[%c0_3, %c0_4] : memref<1x16xf32, #tpu.memory_space<vmem>>, vector<1x16xf32>
    %4 = vector.broadcast %3 : vector<1x16xf32> to vector<128x16xf32>
    %5 = arith.addf %2, %4 : vector<128x16xf32>
    %c0_5 = arith.constant 0 : index
    %c0_6 = arith.constant 0 : index
    %6 = vector.load %arg4[%c0_5, %c0_6] : memref<128x16xi8, #tpu.memory_space<vmem>>, vector<128x16xi8>
    %7 = arith.extsi %6 : vector<128x16xi8> to vector<128x16xi32>
    %c0_i32 = arith.constant 0 : i32
    %8 = vector.broadcast %c0_i32 : i32 to vector<128x16xi32>
    %9 = arith.cmpi ne, %7, %8 : vector<128x16xi32>
    %cst_7 = arith.constant -3.40282347E+38 : f32
    %10 = vector.broadcast %cst_7 : f32 to vector<128x16xf32>
    %11 = arith.select %9, %5, %10 : vector<128x16xi1>, vector<128x16xf32>
    %cst_8 = arith.constant dense<0xFF800000> : vector<128xf32>
    %12 = vector.multi_reduction <maximumf>, %11, %cst_8 [1] : vector<128x16xf32> to vector<128xf32>
    %13 = vector.shape_cast %12 : vector<128xf32> to vector<128x1xf32>
    %14 = vector.broadcast %13 : vector<128x1xf32> to vector<128x16xf32>
    %15 = arith.subf %11, %14 : vector<128x16xf32>
    %16 = math.exp %15 : vector<128x16xf32>
    %cst_9 = arith.constant dense<0.000000e+00> : vector<128xf32>
    %17 = vector.multi_reduction <add>, %16, %cst_9 [1] : vector<128x16xf32> to vector<128xf32>
    %18 = vector.shape_cast %17 : vector<128xf32> to vector<128x1xf32>
    %19 = math.log %18 : vector<128x1xf32>
    %20 = vector.broadcast %19 : vector<128x1xf32> to vector<128x16xf32>
    %21 = arith.subf %15, %20 : vector<128x16xf32>
    %c0_10 = arith.constant 0 : index
    %c0_11 = arith.constant 0 : index
    %22 = vector.load %arg6[%c0_10, %c0_11] : memref<128x16xf32, #tpu.memory_space<vmem>>, vector<128x16xf32>
    tpu.vector_store %arg6[%c0_10, %c0_11], %21 {strides = array<i32>} : memref<128x16xf32, #tpu.memory_space<vmem>>, vector<128x16xf32>,
    %23 = tpu.reciprocal %18 {approx = true} : vector<128x1xf32> -> vector<128x1xf32>
    %24 = vector.broadcast %23 : vector<128x1xf32> to vector<128x16xf32>
    %25 = arith.mulf %16, %24 : vector<128x16xf32>
    %cst_12 = arith.constant -3.40282347E+38 : f32
    %26 = vector.broadcast %cst_12 : f32 to vector<128x16xf32>
    %27 = arith.maximumf %21, %26 : vector<128x16xf32>
    %28 = arith.mulf %27, %25 : vector<128x16xf32>
    %cst_13 = arith.constant dense<0.000000e+00> : vector<128xf32>
    %29 = vector.multi_reduction <add>, %28, %cst_13 [1] : vector<128x16xf32> to vector<128xf32>
    %30 = vector.shape_cast %29 : vector<128xf32> to vector<128x1xf32>
    %cst_14 = arith.constant 0.000000e+00 : f32
    %31 = vector.broadcast %cst_14 : f32 to vector<128x1xf32>
    %32 = arith.subf %31, %30 : vector<128x1xf32>
    %c0_15 = arith.constant 0 : index
    %c0_16 = arith.constant 0 : index
    %33 = vector.load %arg5[%c0_15, %c0_16] : memref<128x1xi32, #tpu.memory_space<vmem>>, vector<128x1xi32>
    %34 = tpu.iota {dimensions = array<i32: 1>} : vector<128x16xi32>
    %35 = vector.broadcast %33 : vector<128x1xi32> to vector<128x16xi32>
    %36 = arith.cmpi eq, %34, %35 : vector<128x16xi32>
    %cst_17 = arith.constant 0.000000e+00 : f32
    %37 = vector.broadcast %cst_17 : f32 to vector<128x16xf32>
    %38 = arith.select %36, %21, %37 : vector<128x16xi1>, vector<128x16xf32>
    %cst_18 = arith.constant dense<0.000000e+00> : vector<128xf32>
    %39 = vector.multi_reduction <add>, %38, %cst_18 [1] : vector<128x16xf32> to vector<128xf32>
    %40 = vector.shape_cast %39 : vector<128xf32> to vector<128x1xf32>
    %c0_19 = arith.constant 0 : index
    %c0_20 = arith.constant 0 : index
    %41 = vector.load %arg7[%c0_19, %c0_20] : memref<128x2xf32, #tpu.memory_space<vmem>>, vector<128x1xf32>
    tpu.vector_store %arg7[%c0_19, %c0_20], %40 {strides = array<i32>} : memref<128x2xf32, #tpu.memory_space<vmem>>, vector<128x1xf32>,
    %c0_21 = arith.constant 0 : index
    %c1 = arith.constant 1 : index
    %42 = vector.load %arg7[%c0_21, %c1] : memref<128x2xf32, #tpu.memory_space<vmem>>, vector<128x1xf32>
    tpu.vector_store %arg7[%c0_21, %c1], %32 {strides = array<i32>} : memref<128x2xf32, #tpu.memory_space<vmem>>, vector<128x1xf32>,
    return
  }
  func.func @transform_0(%arg0: i32) -> (i32, i32) {
    %c0_i32 = arith.constant 0 : i32
    %c0_i32_0 = arith.constant 0 : i32
    return %arg0, %c0_i32 : i32, i32
  }
  func.func @transform_1(%arg0: i32) -> (i32, i32) {
    %c0_i32 = arith.constant 0 : i32
    %c0_i32_0 = arith.constant 0 : i32
    %c0_i32_1 = arith.constant 0 : i32
    return %c0_i32, %c0_i32_0 : i32, i32
  }
  func.func @transform_2(%arg0: i32) -> (i32, i32) {
    %c0_i32 = arith.constant 0 : i32
    %c0_i32_0 = arith.constant 0 : i32
    %c0_i32_1 = arith.constant 0 : i32
    return %c0_i32, %c0_i32_0 : i32, i32
  }
  func.func @transform_3(%arg0: i32) -> (i32, i32) {
    %c0_i32 = arith.constant 0 : i32
    %c0_i32_0 = arith.constant 0 : i32
    return %arg0, %c0_i32 : i32, i32
  }
  func.func @transform_4(%arg0: i32) -> (i32, i32) {
    %c0_i32 = arith.constant 0 : i32
    %c0_i32_0 = arith.constant 0 : i32
    return %arg0, %c0_i32 : i32, i32
  }
  func.func @transform_5(%arg0: i32) -> (i32, i32) {
    %c0_i32 = arith.constant 0 : i32
    %c0_i32_0 = arith.constant 0 : i32
    return %arg0, %c0_i32 : i32, i32
  }
  func.func @transform_6(%arg0: i32) -> (i32, i32) {
    %c0_i32 = arith.constant 0 : i32
    %c0_i32_0 = arith.constant 0 : i32
    return %arg0, %c0_i32 : i32, i32
  }
}

</mosaic_0001>

<bundles_post_ra>
// kernel: _run_action_head.1
= control target key start
LH: loop header
LB: loop body
LE: loop exit
PB: predicated region body
PF: predicated region fallthrough
CT: control target
= control target key end

     0   :  { %v963_v1 = vmov 0   ;;  %vm102_vm0 = vcmask 261120   ;;  %vm276_vm3 = vcmask 130048   ;;  %s1784_s1 = inlined_call_operand.vmem [shape: bf16[32,16], index: 1, kind: input, shape index: {}]   ;;  %s1785_s0 = inlined_call_operand.vmem [shape: bf16[128,32], index: 0, kind: input, shape index: {}]   ;;  %s1786_s4 = inlined_call_operand.vmem [shape: s32[128,1], index: 4, kind: input, shape index: {}]   ;;  %s1787_s3 = inlined_call_operand.vmem [shape: s8[128,16], index: 3, kind: input, shape index: {}]   ;;  %s1788_s2 = inlined_call_operand.vmem [shape: f32[1,16], index: 2, kind: input, shape index: {}]   ;;  %s1789_s5 = inlined_call_operand.vmem [shape: f32[128,16], index: 5, kind: output, shape index: {0}]   ;;  %s1790_s6 = inlined_call_operand.vmem [shape: f32[128,2], index: 6, kind: output, shape index: {1}]  }
   0x1   :  { %v857_v0 = vld [vmem:[%s1784_s1] sm:$0xff]   ;;  %856 = vset.pattern.permute.xlu1 %v963_v1  ;;  %855 = vset.pattern.permute.xlu0 %v963_v1  ;;  %v858_v2 = vld [vmem:[%s1784_s1 + $0x8] sm:$0xff]   ;;  %v863_v7 = vld [vmem:[%s1785_s0 + $0x10] sm:$0xff]  }
   0x2   :  { %830 = vmatprep.subr.bf16.mxu0 %v857_v0  ;;  %850 = vmatprep.subr.bf16.mxu1 %v857_v0  ;;  %v859_v3 = vld [vmem:[%s1785_s0] sm:$0xff]   ;;  %v861_v5 = vld [vmem:[%s1785_s0 + $0x8] sm:$0xff]   ;;  %v865_v8 = vld [vmem:[%s1785_s0 + $0x30] sm:$0xff]  }
   0x3   :  { %831 = vmatpush3.bf16.msra.mxu0 %v857_v0  ;;  %852 = vmatpush3.bf16.msra.mxu1 %v857_v0  ;;  %v860_v4 = vld [vmem:[%s1785_s0 + $0x20] sm:$0xff]   ;;  %v862_v6 = vld [vmem:[%s1785_s0 + $0x28] sm:$0xff]   ;;  %v615_v10 = vld [vmem:[%s1786_s4 + $0x10] sm:$0xff] }
   0x4   :  { %832 = vmatprep.subr.bf16.mxu0 %v858_v2  ;;  %851 = vmatprep.subr.bf16.mxu1 %v858_v2  ;;  %v614_v9 = vld [vmem:[%s1786_s4 + $0x8] sm:$0xff]  ;;  %v613_v11 = vld [vmem:[%s1786_s4] sm:$0xff]  ;;  %v864_v12 = vld [vmem:[%s1785_s0 + $0x18] sm:$0xff]  }
   0x5   :  { %834 = vmatprep.mubr.msk.bf16.mxu0 %vm102_vm0, %v859_v3  ;;  %842 = vmatprep.mubr.msk.bf16.mxu1 %vm102_vm0, %v860_v4  ;;  %v866_v13 = vld [vmem:[%s1785_s0 + $0x38] sm:$0xff]   ;;  %v622_v14 = vld [vmem:[%s1786_s4 + $0x48] sm:$0xff]  ;;  %v617_v17 = vld [vmem:[%s1786_s4 + $0x20] sm:$0xff] }
   0x6   :  { %635 = vperm.xlu1 %856, %v614_v9   ;;  %632 = vperm.xlu0 %855, %v613_v11   ;;  %v616_v15 = vld [vmem:[%s1786_s4 + $0x18] sm:$0xff]  ;;  %v618_v18 = vld [vmem:[%s1786_s4 + $0x28] sm:$0xff]  ;;  %v619_v19 = vld [vmem:[%s1786_s4 + $0x30] sm:$0xff] }
   0x7   :  { %833 = vmatpush3.bf16.msra.mxu0 %v858_v2  ;;  %853 = vmatpush3.bf16.msra.mxu1 %v858_v2  ;;  %v624_v16 = vld [vmem:[%s1786_s4 + $0x58] sm:$0xff]  ;;  %v621_v21 = vld [vmem:[%s1786_s4 + $0x40] sm:$0xff]  ;;  %v623_v22 = vld [vmem:[%s1786_s4 + $0x50] sm:$0xff] }
   0x8   :  { %v620_v20 = vld [vmem:[%s1786_s4 + $0x38] sm:$0xff]  ;;  %v226_v23 = vld [vmem:[%s1787_s3 + $0x10] sm:$0xff]  ;;  %v224_v24 = vld [vmem:[%s1787_s3] sm:$0xff] }
   0x9   :  { %v238_v25 = vunpack.c.2.s8 %v226_v23  ;;  %v230_v26 = vunpack.c.2.s8 %v224_v24  ;;  %v228_v27 = vunpack.c.0.s8 %v224_v24  ;;  %v1082_v28 = vld [vmem:[%s1788_s2] ss:$0 sm:$0xff]  ;;  %v231_v29 = vunpack.c.3.s8 %v224_v24  ;;  %v225_v55 = vld [vmem:[%s1787_s3 + $0x8] sm:$0xff]  ;;  %v1126_v58 = vld [vmem:[%s1787_s3 + $0x18] sm:$0xff] }
   0xa   :  { %835 = vmatmul.mubr.msk.bf16.vlgmr.msra.gmra.mrb[0].mxu0 %vm102_vm0, %v861_v5  ;;  %843 = vmatmul.mubr.msk.bf16.vlgmr.msra.gmra.mrb[0].mxu1 %vm102_vm0, %v862_v6  ;;  %v239_v42 = vunpack.c.3.s8 %v226_v23  ;;  %v236_v43 = vunpack.c.0.s8 %v226_v23  ;;  %v237_v56 = vunpack.c.1.s8 %v226_v23  ;;  %v229_v57 = vunpack.c.1.s8 %v224_v24 }
   0xb   :  { %838 = vmatprep.mubr.msk.bf16.mxu0 %vm102_vm0, %v863_v7  ;;  %846 = vmatprep.mubr.msk.bf16.mxu1 %vm102_vm0, %v865_v8  ;;  %vm1084_vm1 = vcmp.ne.s32.totalorder %v238_v25, 0  ;;  %vm1088_vm2 = vcmp.ne.s32.totalorder %v230_v26, 0  ;;  %vm1094_vm4 = vcmp.ne.s32.totalorder %v228_v27, 0  ;;  %vm247_vm5 = vcmp.ne.s32.totalorder %v231_v29, 0 }
   0xc   :  { %638 = vperm.xlu1 %856, %v615_v10   ;;  %659 = vperm.xlu0 %855, %v622_v14   ;;  %vm255_vm6 = vcmp.ne.s32.totalorder %v239_v42, 0  ;;  %vm252_vm7 = vcmp.ne.s32.totalorder %v236_v43, 0  ;;  %v235_v63 = vunpack.c.3.s8 %v225_v55  ;;  %v234_v0 = vunpack.c.2.s8 %v225_v55 }
   0xd   :  { %vm253_vm8 = vcmp.ne.s32.totalorder %v237_v56, 0  ;;  %vm245_vm9 = vcmp.ne.s32.totalorder %v229_v57, 0  ;;  %v243_v9 = vunpack.c.3.s8 %v1126_v58  ;;  %v242_v10 = vunpack.c.2.s8 %v1126_v58 }
   0xe   :  { %vm251_vm10 = vcmp.ne.s32.totalorder %v235_v63, 0  ;;  %vm250_vm11 = vcmp.ne.s32.totalorder %v234_v0, 0  ;;  %v233_v27 = vunpack.c.1.s8 %v225_v55  ;;  %v232_v29 = vunpack.c.0.s8 %v225_v55 }
   0xf   :  { %vm1150_vm12 = vcmp.ne.s32.totalorder %v243_v9, 0  ;;  %vm1154_vm13 = vcmp.ne.s32.totalorder %v242_v10, 0 }
  0x10   :  { %641 = vperm.xlu1 %856, %v616_v15   ;;  %665 = vperm.xlu0 %855, %v624_v16   ;;  %vm249_vm14 = vcmp.ne.s32.totalorder %v233_v27, 0  ;;  %vm248_vm15 = vcmp.ne.s32.totalorder %v232_v29, 0 }
  0x12   :  { %839 = vmatmul.mubr.msk.bf16.gmra.mrb[4].mxu0 %vm102_vm0, %v864_v12  ;;  %847 = vmatmul.mubr.msk.bf16.gmra.mrb[4].mxu1 %vm102_vm0, %v866_v13 }
  0x14   :  { %644 = vperm.xlu1 %856, %v617_v17  }
  0x18   :  { %647 = vperm.xlu1 %856, %v618_v18  }
  0x1c   :  { %650 = vperm.xlu1 %856, %v619_v19  }
  0x20   :  { %653 = vperm.xlu1 %856, %v620_v20  }
  0x24   :  { %656 = vperm.xlu1 %856, %v621_v21  }
  0x28   :  { %662 = vperm.xlu1 %856, %v623_v22  }
  0x85   :  { %v1212_v55 = vpop.permute.xlu1 %635 }
  0x8b   :  { %v1214_v56 = vpop.permute.xlu1 %638 }
  0x8f   :  { %v1216_v57 = vpop.permute.xlu1 %641 }
  0xdd   :  { %v836_v30 = vpop.f32.mrb[0].mxu0  ;;  %v844_v31 = vpop.f32.mrb[0].mxu1 }
  0xde   :  { %v170_v34 = vadd.f32 %v836_v30, %v1082_v28  ;;  %v202_v35 = vadd.f32 %v844_v31, %v1082_v28  ;;  %v161_v36 = vpop.f32.mrb[1].mxu0  ;;  %v193_v37 = vpop.f32.mrb[1].mxu1 }
  0xdf   :  { %v162_v39 = vadd.f32 %v1082_v28, %v161_v36  ;;  %v837_v40 = vpop.f32.mrb[2].mxu0  ;;  %v845_v41 = vpop.f32.mrb[2].mxu1  ;;  %v194_v51 = vadd.f32 %v1082_v28, %v193_v37  ;;  %v241_v36 = vunpack.c.1.s8 %v1126_v58  ;;  %v240_v37 = vunpack.c.0.s8 %v1126_v58 }
  0xe0   :  { %v173_v44 = vadd.f32 %v837_v40, %v1082_v28  ;;  %v164_v45 = vpop.f32.mrb[3].mxu0  ;;  %v196_v46 = vpop.f32.mrb[3].mxu1  ;;  %v1102_v47 = vsel %vm1084_vm1, %v202_v35, -3.4028235e+38  ;;  %v1106_v48 = vsel %vm1088_vm2, %v170_v34, -3.4028235e+38  ;;  %v205_v52 = vadd.f32 %v845_v41, %v1082_v28 }
  0xe1   :  { %v307_v49 = vsel %vm276_vm3, %v1102_v47, -inf  ;;  %v283_v50 = vsel %vm276_vm3, %v1106_v48, -inf  ;;  %v1118_v54 = vsel %vm1094_vm4, %v162_v39, -3.4028235e+38  ;;  %v165_v1 = vadd.f32 %v1082_v28, %v164_v45  ;;  %v1218_v58 = vpop.permute.xlu1 %644 }
  0xe2   :  { %308 = vmax.xlane.f32.xlu0 %v307_v49  ;;  %284 = vmax.xlane.f32.xlu1 %v283_v50  ;;  %v1114_v53 = vsel %vm247_vm5, %v173_v44, -3.4028235e+38  ;;  %v277_v60 = vsel %vm276_vm3, %v1118_v54, -inf  ;;  %v197_v2 = vadd.f32 %v1082_v28, %v196_v46  ;;  %v1134_v3 = vsel %vm255_vm6, %v205_v52, -3.4028235e+38  ;;  %v626_v52 = vld [vmem:[%s1786_s4 + $0x68] sm:$0xff] }
  0xe3   :  { %v286_v59 = vsel %vm276_vm3, %v1114_v53, -inf  ;;  %v1136_v4 = vsel %vm252_vm7, %v194_v51, -3.4028235e+38  ;;  %v310_v15 = vsel %vm276_vm3, %v1134_v3, -inf  ;;  %v1148_v18 = vsel %vm245_vm9, %v165_v1, -3.4028235e+38 }
  0xe4   :  { %v301_v16 = vsel %vm276_vm3, %v1136_v4, -inf  ;;  %v1146_v17 = vsel %vm253_vm8, %v197_v2, -3.4028235e+38  ;;  %v280_v26 = vsel %vm276_vm3, %v1148_v18, -inf  ;;  %vm257_vm0 = vcmp.ne.s32.totalorder %v241_v36, 0  ;;  %v625_v51 = vld [vmem:[%s1786_s4 + $0x60] sm:$0xff] }
  0xe5   :  { %v840_v61 = vpop.f32.mrb[4].mxu0  ;;  %v848_v62 = vpop.f32.mrb[4].mxu1  ;;  %v304_v25 = vsel %vm276_vm3, %v1146_v17, -inf  ;;  %vm256_vm1 = vcmp.ne.s32.totalorder %v240_v37, 0 }
  0xe6   :  { %287 = vmax.xlane.f32.xlu1 %v286_v59  ;;  %278 = vmax.xlane.f32.xlu0 %v277_v60  ;;  %v177_v5 = vpop.f32.mrb[5].mxu0  ;;  %v209_v6 = vpop.f32.mrb[5].mxu1  ;;  %v186_v11 = vadd.f32 %v840_v61, %v1082_v28  ;;  %v218_v21 = vadd.f32 %v848_v62, %v1082_v28 }
  0xe7   :  { %v841_v7 = vpop.f32.mrb[6].mxu0  ;;  %v849_v8 = vpop.f32.mrb[6].mxu1  ;;  %v178_v32 = vadd.f32 %v1082_v28, %v177_v5  ;;  %v210_v40 = vadd.f32 %v1082_v28, %v209_v6 }
  0xe8   :  { %v189_v12 = vadd.f32 %v841_v7, %v1082_v28  ;;  %v180_v13 = vpop.f32.mrb[7].mxu0  ;;  %v212_v14 = vpop.f32.mrb[7].mxu1  ;;  %v221_v22 = vadd.f32 %v849_v8, %v1082_v28  ;;  %v1162_v24 = vsel %vm250_vm11, %v186_v11, -3.4028235e+38  ;;  %v1180_v35 = vsel %vm1154_vm13, %v218_v21, -3.4028235e+38 }
  0xe9   :  { %v295_v31 = vsel %vm276_vm3, %v1162_v24, -inf  ;;  %v181_v33 = vadd.f32 %v1082_v28, %v180_v13  ;;  %v319_v39 = vsel %vm276_vm3, %v1180_v35, -inf  ;;  %v213_v41 = vadd.f32 %v1082_v28, %v212_v14  ;;  %v1220_v59 = vpop.permute.xlu1 %647  ;;  %v1226_v62 = vpop.permute.xlu0 %632 }
  0xea   :  { %311 = vmax.xlane.f32.xlu1 %v310_v15  ;;  %302 = vmax.xlane.f32.xlu0 %v301_v16  ;;  %v1160_v23 = vsel %vm251_vm10, %v189_v12, -3.4028235e+38  ;;  %v1176_v34 = vsel %vm1150_vm12, %v221_v22, -3.4028235e+38  ;;  %v1192_v43 = vsel %vm248_vm15, %v178_v32, -3.4028235e+38 }
  0xeb   :  { %v298_v30 = vsel %vm276_vm3, %v1160_v23, -inf  ;;  %v322_v38 = vsel %vm276_vm3, %v1176_v34, -inf  ;;  %v1190_v42 = vsel %vm249_vm14, %v181_v33, -3.4028235e+38  ;;  %v289_v45 = vsel %vm276_vm3, %v1192_v43, -inf }
  0xec   :  { %v292_v44 = vsel %vm276_vm3, %v1190_v42, -inf  ;;  %v1198_v46 = vsel %vm257_vm0, %v213_v41, -3.4028235e+38  ;;  %v1200_v49 = vsel %vm256_vm1, %v210_v40, -3.4028235e+38 }
  0xed   :  { %v316_v28 = vsel %vm276_vm3, %v1198_v46, -inf  ;;  %v313_v50 = vsel %vm276_vm3, %v1200_v49, -inf  ;;  %v1222_v60 = vpop.permute.xlu1 %650  ;;  %v1230_v0 = vpop.permute.xlu0 %659 }
  0xee   :  { %305 = vmax.xlane.f32.xlu1 %v304_v25  ;;  %281 = vmax.xlane.f32.xlu0 %v280_v26 }
  0xf1   :  { %v1224_v61 = vpop.permute.xlu1 %653  ;;  %v1234_v2 = vpop.permute.xlu0 %665 }
  0xf2   :  { %299 = vmax.xlane.f32.xlu1 %v298_v30  ;;  %296 = vmax.xlane.f32.xlu0 %v295_v31 }
  0xf5   :  { %v1228_v63 = vpop.permute.xlu1 %656 }
  0xf6   :  { %323 = vmax.xlane.f32.xlu1 %v322_v38  ;;  %320 = vmax.xlane.f32.xlu0 %v319_v39 }
  0xf9   :  { %v1232_v1 = vpop.permute.xlu1 %662 }
  0xfa   :  { %293 = vmax.xlane.f32.xlu1 %v292_v44  ;;  %290 = vmax.xlane.f32.xlu0 %v289_v45 }
  0xfe   :  { %317 = vmax.xlane.f32.xlu1 %v316_v28  ;;  %314 = vmax.xlane.f32.xlu0 %v313_v50 }
 0x10f   :  { %668 = vperm.xlu1 %856, %v625_v51  }
 0x114   :  { %671 = vperm.xlu0 %855, %v626_v52  }
 0x16f   :  { %v309_v5 = vpop.xlane.xlu0 %308  ;;  %v285_v6 = vpop.xlane.xlu1 %284 }
 0x170   :  { %v1237_v7 = vsub.f32 %v1102_v47, %v309_v5  ;;  %v1240_v8 = vsub.f32 %v1106_v48, %v285_v6 }
 0x172   :  { %v345_v9 = vmul.f32 1.442695, %v1240_v8  ;;  %v361_v10 = vmul.f32 1.442695, %v1237_v7 }
 0x173   :  { %v288_v11 = vpop.xlane.xlu1 %287  ;;  %v279_v12 = vpop.xlane.xlu0 %278 }
 0x174   :  { %v1245_v13 = vsub.f32 %v1114_v53, %v288_v11  ;;  %v1248_v14 = vsub.f32 %v1118_v54, %v279_v12  ;;  %867 = vpow2.f32 %v345_v9 }
 0x175   :  { %869 = vpow2.f32 %v361_v10 }
 0x176   :  { %v347_v15 = vmul.f32 1.442695, %v1245_v13  ;;  %v341_v47 = vmul.f32 1.442695, %v1248_v14 }
 0x177   :  { %v312_v48 = vpop.xlane.xlu1 %311  ;;  %v303_v16 = vpop.xlane.xlu0 %302 }
 0x178   :  { %871 = vpow2.f32 %v347_v15  ;;  %v1253_v19 = vsub.f32 %v1134_v3, %v312_v48  ;;  %v1256_v20 = vsub.f32 %v1136_v4, %v303_v16 }
 0x179   :  { %873 = vpow2.f32 %v341_v47 }
 0x17a   :  { %v363_v53 = vmul.f32 1.442695, %v1253_v19  ;;  %v357_v54 = vmul.f32 1.442695, %v1256_v20 }
 0x17b   :  { %v306_v21 = vpop.xlane.xlu1 %305  ;;  %v282_v22 = vpop.xlane.xlu0 %281 }
 0x17c   :  { %875 = vpow2.f32 %v363_v53  ;;  %v1261_v25 = vsub.f32 %v1146_v17, %v306_v21  ;;  %v1264_v26 = vsub.f32 %v1148_v18, %v282_v22 }
 0x17d   :  { %877 = vpow2.f32 %v357_v54 }
 0x17e   :  { %v343_v3 = vmul.f32 1.442695, %v1264_v26  ;;  %v1267_v27 = vpop.eup %867  ;;  %v359_v4 = vmul.f32 1.442695, %v1261_v25 }
 0x17f   :  { %v300_v29 = vpop.xlane.xlu1 %299  ;;  %v297_v30 = vpop.xlane.xlu0 %296  ;;  %v379_v17 = vsel %vm276_vm3, %v1267_v27, 0.0 }
 0x180   :  { %v1271_v31 = vsub.f32 %v1160_v23, %v300_v29  ;;  %v1274_v32 = vsub.f32 %v1162_v24, %v297_v30  ;;  %v1278_v18 = vpop.eup %869  ;;  %879 = vpow2.f32 %v343_v3  ;;  %380 = vadd.xlane.f32.xlu0 %v379_v17 }
 0x181   :  { %881 = vpow2.f32 %v359_v4  ;;  %v403_v41 = vsel %vm276_vm3, %v1278_v18, 0.0 }
 0x182   :  { %v1280_v33 = vpop.eup %871  ;;  %v353_v36 = vmul.f32 1.442695, %v1274_v32  ;;  %v355_v37 = vmul.f32 1.442695, %v1271_v31 }
 0x183   :  { %v324_v38 = vpop.xlane.xlu1 %323  ;;  %v321_v23 = vpop.xlane.xlu0 %320  ;;  %v382_v24 = vsel %vm276_vm3, %v1280_v33, 0.0 }
 0x184   :  { %v1287_v39 = vsub.f32 %v1176_v34, %v324_v38  ;;  %v1290_v40 = vsub.f32 %v1180_v35, %v321_v23  ;;  %383 = vadd.xlane.f32.xlu1 %v382_v24  ;;  %v1294_v44 = vpop.eup %873  ;;  %883 = vpow2.f32 %v353_v36  ;;  %404 = vadd.xlane.f32.xlu0 %v403_v41 }
 0x185   :  { %885 = vpow2.f32 %v355_v37  ;;  %v373_v6 = vsel %vm276_vm3, %v1294_v44, 0.0 }
 0x186   :  { %v1296_v45 = vpop.eup %875  ;;  %v369_v28 = vmul.f32 1.442695, %v1290_v40  ;;  %v371_v50 = vmul.f32 1.442695, %v1287_v39 }
 0x187   :  { %v294_v34 = vpop.xlane.xlu1 %293  ;;  %v291_v51 = vpop.xlane.xlu0 %290  ;;  %v406_v35 = vsel %vm276_vm3, %v1296_v45, 0.0 }
 0x188   :  { %v1303_v52 = vsub.f32 %v1190_v42, %v294_v34  ;;  %v1306_v5 = vsub.f32 %v1192_v43, %v291_v51  ;;  %407 = vadd.xlane.f32.xlu1 %v406_v35  ;;  %v1310_v9 = vpop.eup %877  ;;  %887 = vpow2.f32 %v369_v28  ;;  %374 = vadd.xlane.f32.xlu0 %v373_v6  ;;  %v627_v51 = vld [vmem:[%s1786_s4 + $0x70] sm:$0xff]  ;;  %v628_v35 = vld [vmem:[%s1786_s4 + $0x78] sm:$0xff] }
 0x189   :  { %889 = vpow2.f32 %v371_v50  ;;  %v397_v48 = vsel %vm276_vm3, %v1310_v9, 0.0 }
 0x18a   :  { %v349_v10 = vmul.f32 1.442695, %v1306_v5  ;;  %v1313_v11 = vpop.eup %879  ;;  %v351_v12 = vmul.f32 1.442695, %v1303_v52 }
 0x18b   :  { %v318_v42 = vpop.xlane.xlu1 %317  ;;  %v315_v15 = vpop.xlane.xlu0 %314  ;;  %v376_v16 = vsel %vm276_vm3, %v1313_v11, 0.0 }
 0x18c   :  { %v1317_v43 = vsub.f32 %v1198_v46, %v318_v42  ;;  %v1320_v47 = vsub.f32 %v1200_v49, %v315_v15  ;;  %v1326_v53 = vpop.eup %881  ;;  %891 = vpow2.f32 %v349_v10  ;;  %398 = vadd.xlane.f32.xlu0 %v397_v48  ;;  %377 = vadd.xlane.f32.xlu1 %v376_v16  ;;  %v629_v48 = vlaneseq }
 0x18d   :  { %893 = vpow2.f32 %v351_v12  ;;  %v400_v49 = vsel %vm276_vm3, %v1326_v53, 0.0 }
 0x18e   :  { %v365_v54 = vmul.f32 1.442695, %v1320_v47  ;;  %v1329_v21 = vpop.eup %883  ;;  %v367_v46 = vmul.f32 1.442695, %v1317_v43 }
 0x18f   :  { %v391_v22 = vsel %vm276_vm3, %v1329_v21, 0.0  ;;  %v1336_v3 = vpop.eup %885  ;;  %v1372_v10 = vpop.permute.xlu1 %668 }
 0x190   :  { %895 = vpow2.f32 %v365_v54  ;;  %401 = vadd.xlane.f32.xlu1 %v400_v49  ;;  %392 = vadd.xlane.f32.xlu0 %v391_v22  ;;  %v394_v29 = vsel %vm276_vm3, %v1336_v3, 0.0  ;;  %v1377_v49 = vand.u32 127, %v629_v48 }
 0x191   :  { %897 = vpow2.f32 %v367_v46 }
 0x192   :  { %v1338_v4 = vpop.eup %887  ;;  %vm681_vm2 = vcmp.eq.s32.totalorder %v1377_v49, %v1214_v56  ;;  %vm682_vm4 = vcmp.eq.s32.totalorder %v1377_v49, %v1216_v57  ;;  %vm689_vm5 = vcmp.eq.s32.totalorder %v1377_v49, %v1232_v1  ;;  %vm690_vm6 = vcmp.eq.s32.totalorder %v1377_v49, %v1234_v2 }
 0x193   :  { %v415_v30 = vsel %vm276_vm3, %v1338_v4, 0.0  ;;  %v1344_v17 = vpop.eup %889  ;;  %v1370_v6 = vpop.permute.xlu0 %671  ;;  %vm679_vm7 = vcmp.eq.s32.totalorder %v1377_v49, %v1226_v62  ;;  %vm680_vm8 = vcmp.eq.s32.totalorder %v1377_v49, %v1212_v55  ;;  %vm687_vm9 = vcmp.eq.s32.totalorder %v1377_v49, %v1228_v63 }
 0x194   :  { %395 = vadd.xlane.f32.xlu1 %v394_v29  ;;  %416 = vadd.xlane.f32.xlu0 %v415_v30  ;;  %v418_v37 = vsel %vm276_vm3, %v1344_v17, 0.0  ;;  %vm688_vm10 = vcmp.eq.s32.totalorder %v1377_v49, %v1230_v0  ;;  %vm685_vm11 = vcmp.eq.s32.totalorder %v1377_v49, %v1222_v60  ;;  %vm686_vm12 = vcmp.eq.s32.totalorder %v1377_v49, %v1224_v61 }
 0x195   :  { %vm683_vm13 = vcmp.eq.s32.totalorder %v1377_v49, %v1218_v58  ;;  %vm684_vm14 = vcmp.eq.s32.totalorder %v1377_v49, %v1220_v59  ;;  %vm691_vm15 = vcmp.eq.s32.totalorder %v1377_v49, %v1372_v10  ;;  %vm692_vm0 = vcmp.eq.s32.totalorder %v1377_v49, %v1370_v6 }
 0x196   :  { %v1346_v36 = vpop.eup %891 }
 0x197   :  { %v385_v38 = vsel %vm276_vm3, %v1346_v36, 0.0  ;;  %v1352_v23 = vpop.eup %893 }
 0x198   :  { %419 = vadd.xlane.f32.xlu1 %v418_v37  ;;  %386 = vadd.xlane.f32.xlu0 %v385_v38  ;;  %v388_v41 = vsel %vm276_vm3, %v1352_v23, 0.0 }
 0x19a   :  { %v1354_v24 = vpop.eup %895 }
 0x19b   :  { %v409_v28 = vsel %vm276_vm3, %v1354_v24, 0.0  ;;  %v1360_v50 = vpop.eup %897 }
 0x19c   :  { %389 = vadd.xlane.f32.xlu1 %v388_v41  ;;  %410 = vadd.xlane.f32.xlu0 %v409_v28  ;;  %v412_v34 = vsel %vm276_vm3, %v1360_v50, 0.0 }
 0x1a0   :  { %413 = vadd.xlane.f32.xlu1 %v412_v34 }
 0x1b1   :  { %674 = vperm.xlu1 %856, %v627_v51  }
 0x1b2   :  { %677 = vperm.xlu0 %855, %v628_v35  }
 0x20d   :  { %v381_v12 = vpop.xlane.xlu0 %380 }
 0x20e   :  { %899 = vlog2.f32 %v381_v12 }
 0x211   :  { %v384_v42 = vpop.xlane.xlu1 %383  ;;  %v405_v15 = vpop.xlane.xlu0 %404 }
 0x212   :  { %901 = vlog2.f32 %v384_v42 }
 0x213   :  { %903 = vlog2.f32 %v405_v15 }
 0x215   :  { %v1374_v16 = vpop.xlane.xlu1 %407  ;;  %v375_v54 = vpop.xlane.xlu0 %374 }
 0x216   :  { %905 = vlog2.f32 %v1374_v16 }
 0x217   :  { %907 = vrcp.f32 %v405_v15 }
 0x218   :  { %909 = vlog2.f32 %v375_v54  ;;  %v900_v46 = vpop.eup %899 }
 0x219   :  { %v426_v22 = vmul.f32 0.6931472, %v900_v46  ;;  %v378_v29 = vpop.xlane.xlu1 %377  ;;  %v399_v30 = vpop.xlane.xlu0 %398 }
 0x21a   :  { %911 = vlog2.f32 %v378_v29 }
 0x21b   :  { %913 = vrcp.f32 %v381_v12  ;;  %v1380_v38 = vsub.f32 %v1240_v8, %v426_v22 }
 0x21c   :  { %v902_v37 = vpop.eup %901  ;;  %915 = vlog2.f32 %v399_v30 }
 0x21d   :  { %v428_v41 = vmul.f32 0.6931472, %v902_v37  ;;  %v904_v28 = vpop.eup %903  ;;  %v1384_v34 = vpop.xlane.xlu1 %401  ;;  %v697_v35 = vsel %vm681_vm2, %v1380_v38, 0.0  ;;  %471 = vst.msk [vmem:[%s1789_s5 + $0x10] sm:$0xff] %vm276_vm3, %v1380_v38 }
 0x21e   :  { %v1386_v51 = vpop.xlane.xlu0 %392  ;;  %v442_v8 = vmul.f32 0.6931472, %v904_v28  ;;  %917 = vlog2.f32 %v1384_v34  ;;  %v717_v56 = vsel %vm276_vm3, %v697_v35, 0.0 }
 0x21f   :  { %v1397_v12 = vsub.f32 %v1245_v13, %v428_v41  ;;  %919 = vrcp.f32 %v384_v42  ;;  %718 = vadd.xlane.f32.xlu0 %v717_v56 }
 0x220   :  { %v906_v15 = vpop.eup %905  ;;  %921 = vlog2.f32 %v1386_v51  ;;  %v463_v13 = vsub.f32 %v1237_v7, %v442_v8 }
 0x221   :  { %v908_v48 = vpop.eup %907  ;;  %v444_v46 = vmul.f32 0.6931472, %v906_v15  ;;  %472 = vst.msk [vmem:[%s1789_s5 + $0x18] sm:$0xff] %vm276_vm3, %v1397_v12  ;;  %v698_v22 = vsel %vm682_vm4, %v1397_v12, 0.0  ;;  %923 = vrcp.f32 %v375_v54  ;;  %v1413_v57 = vpop.xlane.xlu1 %395  ;;  %vm759_vm4 = vcmask 7168  }
 0x222   :  { %v910_v37 = vpop.eup %909  ;;  %v1415_v42 = vpop.xlane.xlu0 %416  ;;  %v720_v41 = vsel %vm276_vm3, %v698_v22, 0.0  ;;  %925 = vlog2.f32 %v1413_v57  ;;  %v705_v35 = vsel %vm689_vm5, %v463_v13, 0.0  ;;  %479 = vst.msk [vmem:[%s1789_s5 + $0x50] sm:$0xff] %vm276_vm3, %v463_v13  ;;  %v511_v54 = vmul.f32 %v908_v48, %v1278_v18 }
 0x223   :  { %v422_v28 = vmul.f32 0.6931472, %v910_v37  ;;  %721 = vadd.xlane.f32.xlu1 %v720_v41  ;;  %v1424_v1 = vsub.f32 %v1253_v19, %v444_v46  ;;  %927 = vrcp.f32 %v378_v29  ;;  %v741_v7 = vsel %vm276_vm3, %v705_v35, 0.0 }
 0x224   :  { %v527_v8 = vmax.f32 %v463_v13, -3.4028235e+38  ;;  %v912_v56 = vpop.eup %911  ;;  %929 = vlog2.f32 %v1415_v42  ;;  %742 = vadd.xlane.f32.xlu0 %v741_v7  ;;  %v519_v41 = vmax.f32 %v1380_v38, -3.4028235e+38 }
 0x225   :  { %480 = vst.msk [vmem:[%s1789_s5 + $0x58] sm:$0xff] %vm276_vm3, %v1424_v1  ;;  %v706_v19 = vsel %vm690_vm6, %v1424_v1, 0.0  ;;  %v1441_v18 = vsub.f32 %v1248_v14, %v422_v28  ;;  %v914_v29 = vpop.eup %913  ;;  %v424_v15 = vmul.f32 0.6931472, %v912_v56  ;;  %931 = vrcp.f32 %v399_v30  ;;  %v1443_v48 = vpop.xlane.xlu1 %419 }
 0x226   :  { %v1445_v46 = vpop.xlane.xlu0 %386  ;;  %v744_v22 = vsel %vm276_vm3, %v706_v19, 0.0  ;;  %v543_v13 = vmul.f32 %v527_v8, %v511_v54  ;;  %v916_v37 = vpop.eup %915  ;;  %933 = vlog2.f32 %v1443_v48  ;;  %v503_v35 = vmul.f32 %v914_v29, %v1267_v27 }
 0x227   :  { %745 = vadd.xlane.f32.xlu1 %v744_v22  ;;  %v695_v2 = vsel %vm679_vm7, %v1441_v18, 0.0  ;;  %469 = vst.msk [vmem:[%s1789_s5] sm:$0xff] %vm276_vm3, %v1441_v18  ;;  %935 = vrcp.f32 %v1374_v16  ;;  %v438_v14 = vmul.f32 0.6931472, %v916_v37  ;;  %v1465_v62 = vsub.f32 %v1264_v26, %v424_v15 }
 0x228   :  { %v711_v30 = vsel %vm276_vm3, %v695_v2, 0.0  ;;  %v918_v28 = vpop.eup %917  ;;  %937 = vlog2.f32 %v1445_v46  ;;  %v579_v38 = vsel %vm276_vm3, %v543_v13, 0.0  ;;  %v535_v63 = vmul.f32 %v519_v41, %v503_v35 }
 0x229   :  { %712 = vadd.xlane.f32.xlu0 %v711_v30  ;;  %v920_v7 = vpop.eup %919  ;;  %v440_v54 = vmul.f32 0.6931472, %v918_v28  ;;  %939 = vrcp.f32 %v1384_v34  ;;  %v1469_v16 = vpop.xlane.xlu1 %389  ;;  %v461_v56 = vsub.f32 %v1256_v20, %v438_v14  ;;  %470 = vst.msk [vmem:[%s1789_s5 + $0x8] sm:$0xff] %vm276_vm3, %v1465_v62  ;;  %v696_v26 = vsel %vm680_vm8, %v1465_v62, 0.0 }
 0x22a   :  { %v1471_v8 = vpop.xlane.xlu0 %410  ;;  %v922_v19 = vpop.eup %921  ;;  %941 = vlog2.f32 %v1469_v16  ;;  %v520_v34 = vmax.f32 %v1397_v12, -3.4028235e+38  ;;  %v517_v22 = vmax.f32 %v1441_v18, -3.4028235e+38  ;;  %v714_v30 = vsel %vm276_vm3, %v696_v26, 0.0 }
 0x22b   :  { %580 = vadd.xlane.f32.xlu1 %v579_v38  ;;  %v924_v27 = vpop.eup %923  ;;  %v703_v20 = vsel %vm687_vm9, %v461_v56, 0.0  ;;  %477 = vst.msk [vmem:[%s1789_s5 + $0x40] sm:$0xff] %vm276_vm3, %v461_v56  ;;  %943 = vlog2.f32 %v1471_v8  ;;  %v1497_v55 = vsub.f32 %v1261_v25, %v440_v54  ;;  %v434_v37 = vmul.f32 0.6931472, %v922_v19 }
 0x22c   :  { %v926_v29 = vpop.eup %925  ;;  %v735_v15 = vsel %vm276_vm3, %v703_v20, 0.0  ;;  %v504_v12 = vmul.f32 %v920_v7, %v1280_v33  ;;  %v501_v18 = vmul.f32 %v924_v27, %v1294_v44  ;;  %v555_v33 = vsel %vm276_vm3, %v535_v63, 0.0 }
 0x22d   :  { %v928_v13 = vpop.eup %927  ;;  %v436_v2 = vmul.f32 0.6931472, %v926_v29  ;;  %736 = vadd.xlane.f32.xlu0 %v735_v15  ;;  %v1500_v14 = vpop.xlane.xlu1 %413  ;;  %478 = vst.msk [vmem:[%s1789_s5 + $0x48] sm:$0xff] %vm276_vm3, %v1497_v55  ;;  %v704_v25 = vsel %vm688_vm10, %v1497_v55, 0.0  ;;  %v525_v26 = vmax.f32 %v461_v56, -3.4028235e+38  ;;  %v1522_v44 = vsub.f32 %v1274_v32, %v434_v37 }
 0x22e   :  { %v930_v41 = vpop.eup %929  ;;  %945 = vlog2.f32 %v1500_v14  ;;  %v536_v7 = vmul.f32 %v520_v34, %v504_v12  ;;  %v738_v38 = vsel %vm276_vm3, %v704_v25, 0.0  ;;  %v533_v19 = vmul.f32 %v517_v22, %v501_v18 }
 0x22f   :  { %715 = vadd.xlane.f32.xlu1 %v714_v30  ;;  %v932_v28 = vpop.eup %931  ;;  %v450_v35 = vmul.f32 0.6931472, %v930_v41  ;;  %v518_v20 = vmax.f32 %v1465_v62, -3.4028235e+38  ;;  %v1525_v27 = vsub.f32 %v1271_v31, %v436_v2  ;;  %v502_v32 = vmul.f32 %v928_v13, %v1313_v11  ;;  %475 = vst.msk [vmem:[%s1789_s5 + $0x30] sm:$0xff] %vm276_vm3, %v1522_v44 }
 0x230   :  { %v934_v54 = vpop.eup %933  ;;  %v509_v34 = vmul.f32 %v932_v28, %v1310_v9  ;;  %v549_v9 = vsel %vm276_vm3, %v533_v19, 0.0  ;;  %v528_v11 = vmax.f32 %v1424_v1, -3.4028235e+38  ;;  %v526_v2 = vmax.f32 %v1497_v55, -3.4028235e+38 }
 0x231   :  { %v936_v29 = vpop.eup %935  ;;  %v1519_v15 = vsub.f32 %v1290_v40, %v450_v35  ;;  %v452_v0 = vmul.f32 0.6931472, %v934_v54  ;;  %556 = vadd.xlane.f32.xlu0 %v555_v33  ;;  %476 = vst.msk [vmem:[%s1789_s5 + $0x38] sm:$0xff] %vm276_vm3, %v1525_v27  ;;  %v534_v37 = vmul.f32 %v518_v20, %v502_v32  ;;  %947 = vrcp.f32 %v1386_v51 }
 0x232   :  { %v938_v63 = vpop.eup %937  ;;  %v541_v56 = vmul.f32 %v525_v26, %v509_v34  ;;  %v512_v41 = vmul.f32 %v936_v29, %v1296_v45  ;;  %949 = vrcp.f32 %v1413_v57  ;;  %v701_v57 = vsel %vm685_vm11, %v1522_v44, 0.0 }
 0x233   :  { %739 = vadd.xlane.f32.xlu1 %v738_v38  ;;  %v940_v22 = vpop.eup %939  ;;  %483 = vst.msk [vmem:[%s1789_s5 + $0x70] sm:$0xff] %vm276_vm3, %v1519_v15  ;;  %v1534_v40 = vsub.f32 %v1287_v39, %v452_v0  ;;  %v430_v62 = vmul.f32 0.6931472, %v938_v63  ;;  %v558_v39 = vsel %vm276_vm3, %v536_v7, 0.0  ;;  %v552_v45 = vsel %vm276_vm3, %v534_v37, 0.0 }
 0x234   :  { %v942_v31 = vpop.eup %941  ;;  %v510_v1 = vmul.f32 %v940_v22, %v1326_v53  ;;  %v544_v28 = vmul.f32 %v528_v11, %v512_v41  ;;  %951 = vrcp.f32 %v1415_v42  ;;  %v702_v60 = vsel %vm686_vm12, %v1525_v27, 0.0 }
 0x235   :  { %484 = vst.msk [vmem:[%s1789_s5 + $0x78] sm:$0xff] %vm276_vm3, %v1534_v40  ;;  %v432_v13 = vmul.f32 0.6931472, %v942_v31  ;;  %550 = vadd.xlane.f32.xlu0 %v549_v9  ;;  %v1557_v30 = vsub.f32 %v1306_v5, %v430_v62  ;;  %v944_v12 = vpop.eup %943  ;;  %v573_v5 = vsel %vm276_vm3, %v541_v56, 0.0  ;;  %953 = vrcp.f32 %v1443_v48 }
 0x236   :  { %v446_v25 = vmul.f32 0.6931472, %v944_v12  ;;  %v542_v53 = vmul.f32 %v526_v2, %v510_v1  ;;  %v582_v33 = vsel %vm276_vm3, %v544_v28, 0.0  ;;  %v729_v61 = vsel %vm276_vm3, %v701_v57, 0.0  ;;  %v675_v1 = vpop.permute.xlu1 %674  ;;  %v678_v28 = vpop.permute.xlu0 %677 }
 0x237   :  { %559 = vadd.xlane.f32.xlu1 %v558_v39  ;;  %473 = vst.msk [vmem:[%s1789_s5 + $0x20] sm:$0xff] %vm276_vm3, %v1557_v30  ;;  %v1567_v18 = vsub.f32 %v1303_v52, %v432_v13  ;;  %955 = vrcp.f32 %v1445_v46  ;;  %v699_v42 = vsel %vm683_vm13, %v1557_v30, 0.0  ;;  %v523_v59 = vmax.f32 %v1522_v44, -3.4028235e+38 }
 0x238   :  { %v946_v55 = vpop.eup %945  ;;  %v1578_v52 = vsub.f32 %v1320_v47, %v446_v25  ;;  %v576_v47 = vsel %vm276_vm3, %v542_v53, 0.0  ;;  %957 = vrcp.f32 %v1469_v16  ;;  %v723_v58 = vsel %vm276_vm3, %v699_v42, 0.0 }
 0x239   :  { %v448_v35 = vmul.f32 0.6931472, %v946_v55  ;;  %574 = vadd.xlane.f32.xlu0 %v573_v5  ;;  %474 = vst.msk [vmem:[%s1789_s5 + $0x28] sm:$0xff] %vm276_vm3, %v1567_v18  ;;  %v700_v48 = vsel %vm684_vm14, %v1567_v18, 0.0  ;;  %959 = vrcp.f32 %v1471_v8  ;;  %v524_v38 = vmax.f32 %v1525_v27, -3.4028235e+38 }
 0x23a   :  { %481 = vst.msk [vmem:[%s1789_s5 + $0x60] sm:$0xff] %vm276_vm3, %v1578_v52  ;;  %v726_v46 = vsel %vm276_vm3, %v700_v48, 0.0  ;;  %v707_v16 = vsel %vm691_vm15, %v1578_v52, 0.0  ;;  %961 = vrcp.f32 %v1500_v14  ;;  %v531_v0 = vmax.f32 %v1519_v15, -3.4028235e+38 }
 0x23b   :  { %553 = vadd.xlane.f32.xlu1 %v552_v45  ;;  %v1587_v51 = vsub.f32 %v1317_v43, %v448_v35  ;;  %v732_v43 = vsel %vm276_vm3, %v702_v60, 0.0  ;;  %v948_v7 = vpop.eup %947  ;;  %v747_v8 = vsel %vm276_vm3, %v707_v16, 0.0  ;;  %v532_v14 = vmax.f32 %v1534_v40, -3.4028235e+38 }
 0x23c   :  { %v950_v54 = vpop.eup %949  ;;  %v507_v6 = vmul.f32 %v948_v7, %v1329_v21  ;;  %v521_v32 = vmax.f32 %v1557_v30, -3.4028235e+38  ;;  %v522_v39 = vmax.f32 %v1567_v18, -3.4028235e+38  ;;  %v529_v2 = vmax.f32 %v1578_v52, -3.4028235e+38 }
 0x23d   :  { %583 = vadd.xlane.f32.xlu0 %v582_v33  ;;  %482 = vst.msk [vmem:[%s1789_s5 + $0x68] sm:$0xff] %vm276_vm3, %v1587_v51  ;;  %v708_v10 = vsel %vm692_vm0, %v1587_v51, 0.0  ;;  %v508_v26 = vmul.f32 %v950_v54, %v1336_v3  ;;  %v530_v41 = vmax.f32 %v1587_v51, -3.4028235e+38  ;;  %vm693_vm1 = vcmp.eq.s32.totalorder %v1377_v49, %v675_v1 }
 0x23e   :  { %v952_v19 = vpop.eup %951  ;;  %v539_v29 = vmul.f32 %v523_v59, %v507_v6  ;;  %v750_v44 = vsel %vm276_vm3, %v708_v10, 0.0  ;;  %vm694_vm2 = vcmp.eq.s32.totalorder %v1377_v49, %v678_v28 }
 0x23f   :  { %577 = vadd.xlane.f32.xlu1 %v576_v47  ;;  %v954_v20 = vpop.eup %953  ;;  %v540_v27 = vmul.f32 %v524_v38, %v508_v26  ;;  %v515_v63 = vmul.f32 %v952_v19, %v1338_v4  ;;  %v710_v45 = vsel %vm694_vm2, %v1534_v40, 0.0 }
 0x240   :  { %v516_v21 = vmul.f32 %v954_v20, %v1344_v17  ;;  %v567_v3 = vsel %vm276_vm3, %v539_v29, 0.0  ;;  %v756_v52 = vsel %vm276_vm3, %v710_v45, 0.0 }
 0x241   :  { %730 = vadd.xlane.f32.xlu0 %v729_v61  ;;  %v956_v34 = vpop.eup %955  ;;  %v547_v62 = vmul.f32 %v531_v0, %v515_v63  ;;  %v570_v31 = vsel %vm276_vm3, %v540_v27, 0.0 }
 0x242   :  { %v958_v22 = vpop.eup %957  ;;  %v548_v9 = vmul.f32 %v532_v14, %v516_v21  ;;  %v505_v56 = vmul.f32 %v956_v34, %v1346_v36 }
 0x243   :  { %733 = vadd.xlane.f32.xlu1 %v732_v43  ;;  %v960_v11 = vpop.eup %959  ;;  %v506_v4 = vmul.f32 %v958_v22, %v1352_v23  ;;  %v591_v17 = vsel %vm276_vm3, %v547_v62, 0.0 }
 0x244   :  { %v962_v13 = vpop.eup %961  ;;  %v537_v37 = vmul.f32 %v521_v32, %v505_v56  ;;  %v594_v30 = vsel %vm276_vm3, %v548_v9, 0.0  ;;  %v513_v25 = vmul.f32 %v960_v11, %v1354_v24 }
 0x245   :  { %724 = vadd.xlane.f32.xlu0 %v723_v58  ;;  %v538_v12 = vmul.f32 %v522_v39, %v506_v4  ;;  %v514_v36 = vmul.f32 %v962_v13, %v1360_v50  ;;  %v709_v50 = vsel %vm693_vm1, %v1519_v15, 0.0 }
 0x246   :  { %v561_v23 = vsel %vm276_vm3, %v537_v37, 0.0  ;;  %v545_v18 = vmul.f32 %v529_v2, %v513_v25  ;;  %v753_v53 = vsel %vm276_vm3, %v709_v50, 0.0 }
 0x247   :  { %727 = vadd.xlane.f32.xlu1 %v726_v46  ;;  %v564_v55 = vsel %vm276_vm3, %v538_v12, 0.0  ;;  %v546_v5 = vmul.f32 %v530_v41, %v514_v36 }
 0x248   :  { %v585_v35 = vsel %vm276_vm3, %v545_v18, 0.0 }
 0x249   :  { %748 = vadd.xlane.f32.xlu0 %v747_v8  ;;  %v588_v24 = vsel %vm276_vm3, %v546_v5, 0.0  ;;  %vm776_vm3 = vcmask 15368  }
 0x24b   :  { %751 = vadd.xlane.f32.xlu1 %v750_v44 }
 0x24d   :  { %568 = vadd.xlane.f32.xlu0 %v567_v3 }
 0x24f   :  { %571 = vadd.xlane.f32.xlu1 %v570_v31 }
 0x251   :  { %592 = vadd.xlane.f32.xlu0 %v591_v17 }
 0x253   :  { %595 = vadd.xlane.f32.xlu1 %v594_v30 }
 0x255   :  { %562 = vadd.xlane.f32.xlu0 %v561_v23 }
 0x257   :  { %565 = vadd.xlane.f32.xlu1 %v564_v55 }
 0x259   :  { %586 = vadd.xlane.f32.xlu0 %v585_v35 }
 0x25b   :  { %589 = vadd.xlane.f32.xlu1 %v588_v24 }
 0x25d   :  { %754 = vadd.xlane.f32.xlu0 %v753_v53 }
 0x25f   :  { %757 = vadd.xlane.f32.xlu1 %v756_v52 }
 0x2ac   :  { %v719_v51 = vpop.xlane.xlu0 %718 }
 0x2ad   :  { %762 = vst.msk [vmem:[%s1790_s6 + $0x10] sm:$0xff] %vm759_vm4, %v719_v51 }
 0x2b0   :  { %v722_v49 = vpop.xlane.xlu1 %721 }
 0x2b1   :  { %763 = vst.msk [vmem:[%s1790_s6 + $0x18] sm:$0xff] %vm759_vm4, %v722_v49  ;;  %v743_v15 = vpop.xlane.xlu0 %742 }
 0x2b2   :  { %770 = vst.msk [vmem:[%s1790_s6 + $0x50] sm:$0xff] %vm759_vm4, %v743_v15 }
 0x2b4   :  { %v746_v40 = vpop.xlane.xlu1 %745 }
 0x2b5   :  { %771 = vst.msk [vmem:[%s1790_s6 + $0x58] sm:$0xff] %vm759_vm4, %v746_v40 }
 0x2b6   :  { %v713_v33 = vpop.xlane.xlu0 %712 }
 0x2b7   :  { %760 = vst.msk [vmem:[%s1790_s6] sm:$0xff] %vm759_vm4, %v713_v33 }
 0x2b8   :  { %v581_v47 = vpop.xlane.xlu1 %580 }
 0x2b9   :  { %v607_v57 = vsub.f32 0.0, %v581_v47 }
 0x2ba   :  { %v737_v60 = vpop.xlane.xlu0 %736 }
 0x2bb   :  { %787 = vst.msk [vmem:[%s1790_s6 + $0x50] sm:$0xff] %vm776_vm3, %v607_v57 }
 0x2bc   :  { %768 = vst.msk [vmem:[%s1790_s6 + $0x40] sm:$0xff] %vm759_vm4, %v737_v60  ;;  %v716_v61 = vpop.xlane.xlu1 %715 }
 0x2bd   :  { %761 = vst.msk [vmem:[%s1790_s6 + $0x8] sm:$0xff] %vm759_vm4, %v716_v61 }
 0x2be   :  { %v557_v43 = vpop.xlane.xlu0 %556 }
 0x2bf   :  { %v599_v42 = vsub.f32 0.0, %v557_v43 }
 0x2c0   :  { %v740_v7 = vpop.xlane.xlu1 %739 }
 0x2c1   :  { %769 = vst.msk [vmem:[%s1790_s6 + $0x48] sm:$0xff] %vm759_vm4, %v740_v7 }
 0x2c2   :  { %779 = vst.msk [vmem:[%s1790_s6 + $0x10] sm:$0xff] %vm776_vm3, %v599_v42  ;;  %v551_v48 = vpop.xlane.xlu0 %550 }
 0x2c3   :  { %v597_v54 = vsub.f32 0.0, %v551_v48 }
 0x2c4   :  { %v560_v58 = vpop.xlane.xlu1 %559 }
 0x2c5   :  { %v600_v59 = vsub.f32 0.0, %v560_v58  ;;  %777 = vst.msk [vmem:[%s1790_s6] sm:$0xff] %vm776_vm3, %v597_v54 }
 0x2c6   :  { %v575_v46 = vpop.xlane.xlu0 %574 }
 0x2c7   :  { %780 = vst.msk [vmem:[%s1790_s6 + $0x18] sm:$0xff] %vm776_vm3, %v600_v59  ;;  %v605_v16 = vsub.f32 0.0, %v575_v46 }
 0x2c8   :  { %v554_v38 = vpop.xlane.xlu1 %553 }
 0x2c9   :  { %v598_v10 = vsub.f32 0.0, %v554_v38  ;;  %785 = vst.msk [vmem:[%s1790_s6 + $0x40] sm:$0xff] %vm776_vm3, %v605_v16 }
 0x2ca   :  { %v584_v6 = vpop.xlane.xlu0 %583 }
 0x2cb   :  { %778 = vst.msk [vmem:[%s1790_s6 + $0x8] sm:$0xff] %vm776_vm3, %v598_v10  ;;  %v608_v19 = vsub.f32 0.0, %v584_v6 }
 0x2cc   :  { %v578_v26 = vpop.xlane.xlu1 %577 }
 0x2cd   :  { %v606_v20 = vsub.f32 0.0, %v578_v26  ;;  %788 = vst.msk [vmem:[%s1790_s6 + $0x58] sm:$0xff] %vm776_vm3, %v608_v19 }
 0x2ce   :  { %v731_v8 = vpop.xlane.xlu0 %730 }
 0x2cf   :  { %786 = vst.msk [vmem:[%s1790_s6 + $0x48] sm:$0xff] %vm776_vm3, %v606_v20 }
 0x2d0   :  { %766 = vst.msk [vmem:[%s1790_s6 + $0x30] sm:$0xff] %vm759_vm4, %v731_v8  ;;  %v734_v29 = vpop.xlane.xlu1 %733 }
 0x2d1   :  { %767 = vst.msk [vmem:[%s1790_s6 + $0x38] sm:$0xff] %vm759_vm4, %v734_v29 }
 0x2d2   :  { %v725_v0 = vpop.xlane.xlu0 %724 }
 0x2d3   :  { %764 = vst.msk [vmem:[%s1790_s6 + $0x20] sm:$0xff] %vm759_vm4, %v725_v0 }
 0x2d4   :  { %v728_v44 = vpop.xlane.xlu1 %727 }
 0x2d5   :  { %765 = vst.msk [vmem:[%s1790_s6 + $0x28] sm:$0xff] %vm759_vm4, %v728_v44 }
 0x2d6   :  { %v749_v27 = vpop.xlane.xlu0 %748 }
 0x2d7   :  { %772 = vst.msk [vmem:[%s1790_s6 + $0x60] sm:$0xff] %vm759_vm4, %v749_v27 }
 0x2d8   :  { %v752_v14 = vpop.xlane.xlu1 %751 }
 0x2d9   :  { %773 = vst.msk [vmem:[%s1790_s6 + $0x68] sm:$0xff] %vm759_vm4, %v752_v14 }
 0x2da   :  { %v569_v63 = vpop.xlane.xlu0 %568 }
 0x2db   :  { %v603_v34 = vsub.f32 0.0, %v569_v63 }
 0x2dc   :  { %v572_v21 = vpop.xlane.xlu1 %571 }
 0x2dd   :  { %v604_v22 = vsub.f32 0.0, %v572_v21  ;;  %783 = vst.msk [vmem:[%s1790_s6 + $0x30] sm:$0xff] %vm776_vm3, %v603_v34 }
 0x2de   :  { %v593_v3 = vpop.xlane.xlu0 %592 }
 0x2df   :  { %784 = vst.msk [vmem:[%s1790_s6 + $0x38] sm:$0xff] %vm776_vm3, %v604_v22  ;;  %v611_v17 = vsub.f32 0.0, %v593_v3 }
 0x2e0   :  { %v596_v62 = vpop.xlane.xlu1 %595 }
 0x2e1   :  { %v612_v2 = vsub.f32 0.0, %v596_v62 }
 0x2e2   :  { %v563_v32 = vpop.xlane.xlu0 %562 }
 0x2e3   :  { %v601_v31 = vsub.f32 0.0, %v563_v32 }
 0x2e4   :  { %v566_v9 = vpop.xlane.xlu1 %565 }
 0x2e5   :  { %v602_v39 = vsub.f32 0.0, %v566_v9  ;;  %781 = vst.msk [vmem:[%s1790_s6 + $0x20] sm:$0xff] %vm776_vm3, %v601_v31 }
 0x2e6   :  { %v587_v56 = vpop.xlane.xlu0 %586 }
 0x2e7   :  { %782 = vst.msk [vmem:[%s1790_s6 + $0x28] sm:$0xff] %vm776_vm3, %v602_v39  ;;  %v609_v11 = vsub.f32 0.0, %v587_v56 }
 0x2e8   :  { %v590_v4 = vpop.xlane.xlu1 %589 }
 0x2e9   :  { %v610_v13 = vsub.f32 0.0, %v590_v4  ;;  %789 = vst.msk [vmem:[%s1790_s6 + $0x60] sm:$0xff] %vm776_vm3, %v609_v11 }
 0x2ea   :  { %v755_v37 = vpop.xlane.xlu0 %754 }
 0x2eb   :  { %790 = vst.msk [vmem:[%s1790_s6 + $0x68] sm:$0xff] %vm776_vm3, %v610_v13 }
 0x2ec   :  { %774 = vst.msk [vmem:[%s1790_s6 + $0x70] sm:$0xff] %vm759_vm4, %v755_v37  ;;  %v758_v30 = vpop.xlane.xlu1 %757 }
 0x2ed   :  { %791 = vst.msk [vmem:[%s1790_s6 + $0x70] sm:$0xff] %vm776_vm3, %v611_v17 }
 0x2ee   :  { %775 = vst.msk [vmem:[%s1790_s6 + $0x78] sm:$0xff] %vm759_vm4, %v758_v30 }
 0x2ef   :  { %792 = vst.msk [vmem:[%s1790_s6 + $0x78] sm:$0xff] %vm776_vm3, %v612_v2 }

</bundles_post_ra>
